<compile_context>
chip_gen: v7x
topology: tpu7x:2x2x1
jax: 0.10.0
libtpu: 0.0.40
codegen_flags: <defaults>
</compile_context>

<pallas_src>
import numpy as np
import jax
import jax.numpy as jnp
from jax import lax
from jax.experimental import pallas as pl
from jax.experimental.pallas import tpu as pltpu


# ----------------------------------------------------------------------------
# Diffusion schedule (guided_diffusion 'linear', 1000 steps) -- host-side setup
# ----------------------------------------------------------------------------
def linear_alphas_cumprod(num_steps=1000):
    scale = 1000.0 / num_steps
    betas = np.linspace(scale * 1e-4, scale * 2e-2, num_steps, dtype=np.float64)
    return np.cumprod(1.0 - betas)


def schedule_scalars(t, num_steps=1000):
    ac = linear_alphas_cumprod(num_steps)
    a = float(ac[t])
    return jnp.array(
        [np.sqrt(a), np.sqrt(1.0 - a), np.sqrt(1.0 / a), np.sqrt(1.0 / a - 1.0)],
        dtype=jnp.float32)


# ----------------------------------------------------------------------------
# get_res_index adapted to (H, W); exact port of the reference loop.
# (Used only by the pure-JAX reference; the Pallas kernel synthesizes the same
#  masks in-kernel via iota.)
# ----------------------------------------------------------------------------
def get_res_index_np(H, W):
    shape = H * W
    A = np.zeros(shape, dtype=bool)
    Bm = np.zeros(shape, dtype=bool)
    count = 0
    for i in range(shape):
        if i % 2 == 0:
            if count % 2 == 0:
                A[i] = True
                Bm[i + 1] = True
            else:
                A[i + 1] = True
                Bm[i] = True
        if i % W == 0:
            count += 1
    A = np.broadcast_to(A.reshape(1, H, W), (3, H, W)).astype(np.float32)
    Bm = np.broadcast_to(Bm.reshape(1, H, W), (3, H, W)).astype(np.float32)
    return A, Bm


# ----------------------------------------------------------------------------
# Helpers
# ----------------------------------------------------------------------------
def _round_up(v, m):
    return (v + m - 1) // m * m


def _vmem_capacity_bytes():
    """Per-core VMEM capacity; conservative 64 MiB (v7x) if query fails."""
    try:
        info = pltpu.get_tpu_info()
        cap = getattr(info, "vmem_capacity_bytes", None)
        if cap:
            return int(cap)
    except Exception:
        pass
    return 64 * 1024 * 1024


def _largest_tile(dim, max_tile, mult=128):
    """Largest divisor of `dim` that is a multiple of `mult` and <= max_tile.

    Falls back to the full `dim` only when it actually fits under `max_tile`;
    never emits an over-budget full-extent block (latent VMEM OOM otherwise).
    """
    t = (min(dim, max_tile) // mult) * mult
    while t >= mult:
        if dim % t == 0:
            return t
        t -= mult
    if dim <= max_tile:
        return dim
    raise ValueError(
        f"Cannot tile dim={dim}: no multiple-of-{mult} divisor <= {max_tile}.")


# ----------------------------------------------------------------------------
# Fused pre-classifier kernel (one grid step per batch element)
#   q_sample -> eps surrogate (VPU channel mix) -> pred_xstart + clip ->
#   (x+1)/2 -> {mask_l, mask_r} x (pair-sum + duplicate along W), all masks /
#   pair-sum matrices synthesized in-kernel, one bf16 MXU dot per step.
# ----------------------------------------------------------------------------
def fused_preclassifier_kernel(sched_ref, w_ref, b_ref, x_ref, noise_ref, out_ref):
    C, H, W = x_ref.shape
    CH = C * H
    sa = sched_ref[0]       # sqrt(alphas_cumprod[t])
    s1 = sched_ref[1]       # sqrt(1 - alphas_cumprod[t])
    sr = sched_ref[2]       # sqrt(1 / alphas_cumprod[t])
    sr1 = sched_ref[3]      # sqrt(1 / alphas_cumprod[t] - 1)

    # q_sample fused with the x*2-1 rescale, per channel in NCHW (VPU).
    xt = [sa * (x_ref[c] * 2.0 - 1.0) + s1 * noise_ref[c] for c in range(C)]

    imgs = []
    for c in range(C):
        # 1x1-conv epsilon surrogate as a VPU channel mix (scalar SMEM weights).
        acc = xt[0] * w_ref[0, c]
        for k in range(1, C):
            acc = acc + xt[k] * w_ref[k, c]
        eps_c = acc + b_ref[0, c]
        # pred_xstart with clip_denoised, then imgs = (pred + 1) / 2.
        pred = jnp.clip(sr * xt[c] - sr1 * eps_c, -1.0, 1.0)
        imgs.append((pred + 1.0) * 0.5)
    img = jnp.concatenate(imgs, axis=0)                       # (C*H, W) f32

    # Exact get_res_index checkerboard, synthesized in-kernel.
    # mask_l[r, c] = ((r + c) odd) XOR (c < 2);  mask_r = NOT mask_l.
    # (H even => row parity within the stacked (C*H) layout equals image-row
    #  parity, so the mask can be generated directly at (C*H, W).)
    row = lax.broadcasted_iota(jnp.int32, (CH, W), 0)
    col = lax.broadcasted_iota(jnp.int32, (CH, W), 1)
    par_odd = ((row + col) & 1) == 1
    mask_l = jnp.logical_xor(par_odd, col < 2)
    masked_l = jnp.where(mask_l, img, 0.0).astype(jnp.bfloat16)
    masked_r = jnp.where(mask_l, 0.0, img).astype(jnp.bfloat16)

    # Pair-sum + duplicate along W as a lane matmul:
    #   S[i, j] = 1  iff  i // 2 == j // 2   (0/1 entries, exact in bf16)
    wi = lax.broadcasted_iota(jnp.int32, (W, W), 0)
    wj = lax.broadcasted_iota(jnp.int32, (W, W), 1)
    pair = ((wi >> 1) == (wj >> 1)).astype(jnp.bfloat16)

    stacked = jnp.concatenate([masked_l, masked_r], axis=0)   # (2*C*H, W) bf16
    res = jnp.dot(stacked, pair, preferred_element_type=jnp.float32)

    out_ref[0] = res[:CH].reshape(C, H, W).astype(out_ref.dtype)
    out_ref[1] = res[CH:].reshape(C, H, W).astype(out_ref.dtype)


def fused_preclassifier(x, noise, w_eps, b_eps, sched):
    B, C, H, W = x.shape
    assert H % 8 == 0 and W % 2 == 0
    img_spec = pl.BlockSpec((None, C, H, W), lambda i: (i, 0, 0, 0))
    smem_spec = pl.BlockSpec(memory_space=pltpu.MemorySpace.SMEM)
    return pl.pallas_call(
        fused_preclassifier_kernel,
        out_shape=jax.ShapeDtypeStruct((2, B, C, H, W), jnp.bfloat16),
        grid=(B,),
        in_specs=[smem_spec,      # sched (4,) f32
                  smem_spec,      # w_eps (C, C)
                  smem_spec,      # b_eps (1, C)
                  img_spec,       # x
                  img_spec],      # noise
        out_specs=pl.BlockSpec((2, None, C, H, W), lambda i: (0, i, 0, 0, 0)),
        compiler_params=pltpu.CompilerParams(
            dimension_semantics=("parallel",)),
    )(sched, w_eps, b_eps, x, noise)


# ----------------------------------------------------------------------------
# Dual classifier head: (2, M, K) bf16 x (2, K, Npad) bf16 -> (2, M, Npad) f32
# Leading axis = {left head, right head}, marked "parallel" (each v7x TC
# streams one head).  K is the last ("arbitrary") reduction axis with an f32
# VMEM accumulator; bias added exactly once at the final K step.
# ----------------------------------------------------------------------------
def dual_head_kernel(a_ref, w_ref, b_ref, o_ref, acc_ref):
    k = pl.program_id(2)

    @pl.when(k == 0)
    def _():
        acc_ref[...] = jnp.zeros_like(acc_ref)

    acc_ref[...] += jnp.dot(a_ref[...], w_ref[...],
                            preferred_element_type=jnp.float32)

    @pl.when(k == pl.num_programs(2) - 1)
    def _():
        o_ref[...] = acc_ref[...] + b_ref[...]


def dual_head_matmul(a, w, b):
    """a: (2, M, K) bf16, w: (2, K, Npad) bf16, b: (2, 1, Npad) f32."""
    nheads, M, K = a.shape
    _, Kw, Npad = w.shape
    assert nheads == 2 and Kw == K and Npad % 128 == 0 and M % 8 == 0

    tn = Npad                               # single lane-dense N block (1024)
    vmem_cap = _vmem_capacity_bytes()
    # Size the double-buffered bf16 weight tile to ~40% of per-core VMEM:
    #   64 MiB (v7x)  -> tk = 6272 for K = 3*224*224
    #   128 MiB (v5e/v6e) -> tk = 12544
    weight_budget = max(4 << 20, int(vmem_cap * 0.4))
    max_tk = max(128, weight_budget // (2 * 2 * tn))
    tk = _largest_tile(K, max_tk, 128)

    vmem_need = (2 * tk * tn * 2            # weights (bf16, double-buffered)
                 + 2 * M * tk * 2           # activations (bf16)
                 + 2 * M * tn * 4           # output (f32)
                 + 2 * tn * 4               # bias
                 + M * tn * 4)              # accumulator scratch
    vmem_limit = min(int(vmem_cap * 0.9), max(vmem_need + (4 << 20), 32 << 20))

    return pl.pallas_call(
        dual_head_kernel,
        out_shape=jax.ShapeDtypeStruct((2, M, Npad), jnp.float32),
        grid=(2, Npad // tn, K // tk),
        in_specs=[
            pl.BlockSpec((None, M, tk), lambda h, n, k: (h, 0, k)),   # acts
            pl.BlockSpec((None, tk, tn), lambda h, n, k: (h, k, n)),  # weights
            pl.BlockSpec((None, 1, tn), lambda h, n, k: (h, 0, n)),   # bias
        ],
        out_specs=pl.BlockSpec((None, M, tn), lambda h, n, k: (h, 0, n)),
        scratch_shapes=[pltpu.VMEM((M, tn), jnp.float32)],
        compiler_params=pltpu.CompilerParams(
            dimension_semantics=("parallel", "parallel", "arbitrary"),
            vmem_limit_bytes=vmem_limit),
    )(a, w, b)


# ----------------------------------------------------------------------------
# DiffusionRobustModel.forward(x, t, l_r)
# ----------------------------------------------------------------------------
def diffusion_robust_forward(x, t, l_r, params):
    del l_r  # unused by the reference forward as well
    B, C, H, W = x.shape
    K = C * H * W

    sched = schedule_scalars(t)
    imgs = fused_preclassifier(x, params["noise"], params["w_eps"],
                               params["b_eps"], sched)        # (2, B, C, H, W) bf16

    feats = imgs.reshape(2, B, K)                             # bf16, NCHW flatten
    M = max(8, _round_up(B, 8))                               # sublane-minimum rows
    if M != B:
        feats = jnp.pad(feats, ((0, 0), (0, M - B), (0, 0)))

    out = dual_head_matmul(feats, params["w_cls"], params["b_cls"])  # (2, M, Npad)
    nc = params["num_classes"]
    return out[0, :B, :nc], out[1, :B, :nc]


# ----------------------------------------------------------------------------
# Pure-JAX reference (for correctness checking against the Pallas path)
# ----------------------------------------------------------------------------
def reference_forward(x, t, params):
    ac = linear_alphas_cumprod(1000)
    sa, s1 = np.sqrt(ac[t]), np.sqrt(1.0 - ac[t])
    sr, sr1 = np.sqrt(1.0 / ac[t]), np.sqrt(1.0 / ac[t] - 1.0)
    x_in = x * 2.0 - 1.0
    x_t = sa * x_in + s1 * params["noise"]
    eps = (jnp.einsum("bkhw,kc->bchw", x_t, params["w_eps"])
           + params["b_eps"].reshape(1, -1, 1, 1))
    pred = jnp.clip(sr * x_t - sr1 * eps, -1.0, 1.0)
    imgs = (pred + 1.0) * 0.5

    def branch(mask):
        y = imgs * mask[None]
        pair = y[..., 0::2] + y[..., 1::2]
        return jnp.repeat(pair, 2, axis=-1)

    def head(imz, w, b):
        feats = imz.reshape(imz.shape[0], -1).astype(jnp.bfloat16)
        out = jnp.dot(feats, w, preferred_element_type=jnp.float32) + b
        return out[:, :params["num_classes"]]

    out_l = head(branch(params["mask_l"]), params["w_cls"][0], params["b_cls"][0])
    out_r = head(branch(params["mask_r"]), params["w_cls"][1], params["b_cls"][1])
    return out_l, out_r


# ----------------------------------------------------------------------------
if __name__ == "__main__":
    B, C, H, W = 2, 3, 16, 16          # small stand-in for (B, 3, 224, 224)
    NUM_CLASSES = 1000
    t = 100

    key = jax.random.PRNGKey(0)
    kx, kn, ke, kl1, kl2, kr1, kr2 = jax.random.split(key, 7)

    x = jax.random.uniform(kx, (B, C, H, W), dtype=jnp.float32)      # images in [0,1]
    noise = jax.random.normal(kn, (B, C, H, W), dtype=jnp.float32)   # torch.randn_like

    mask_l_np, mask_r_np = get_res_index_np(H, W)                    # reference only

    # deterministic surrogates (eps predictor + classifier heads)
    K = C * H * W
    w_eps = 0.1 * jax.random.normal(ke, (C, C), dtype=jnp.float32)
    b_eps = jnp.zeros((1, C), dtype=jnp.float32)
    w_cls_l = 0.02 * jax.random.normal(kl1, (K, NUM_CLASSES), dtype=jnp.float32)
    b_cls_l = 0.01 * jax.random.normal(kl2, (1, NUM_CLASSES), dtype=jnp.float32)
    w_cls_r = 0.02 * jax.random.normal(kr1, (K, NUM_CLASSES), dtype=jnp.float32)
    b_cls_r = 0.01 * jax.random.normal(kr2, (1, NUM_CLASSES), dtype=jnp.float32)

    # Pad head N to a multiple of 128 (lane-dense stores), cast weights to bf16,
    # and stack the two heads along a leading axis of size 2.
    Npad = _round_up(NUM_CLASSES, 128)

    def pad_head(w, b):
        w_p = jnp.pad(w, ((0, 0), (0, Npad - NUM_CLASSES))).astype(jnp.bfloat16)
        b_p = jnp.pad(b, ((0, 0), (0, Npad - NUM_CLASSES))).astype(jnp.float32)
        return w_p, b_p

    wl, bl = pad_head(w_cls_l, b_cls_l)
    wr, br = pad_head(w_cls_r, b_cls_r)

    params = dict(
        noise=noise,
        w_eps=w_eps, b_eps=b_eps,
        w_cls=jnp.stack([wl, wr]),          # (2, K, Npad) bf16
        b_cls=jnp.stack([bl, br]),          # (2, 1, Npad) f32
        mask_l=jnp.asarray(mask_l_np), mask_r=jnp.asarray(mask_r_np),
        num_classes=NUM_CLASSES,
    )

    out_l, out_r = diffusion_robust_forward(x, t, l_r=0, params=params)
    jax.block_until_ready((out_l, out_r))
    assert out_l.shape == (B, NUM_CLASSES) and out_r.shape == (B, NUM_CLASSES)

    ref_l, ref_r = reference_forward(x, t, params)
    np.testing.assert_allclose(np.asarray(out_l), np.asarray(ref_l), rtol=2e-2, atol=2e-2)
    np.testing.assert_allclose(np.asarray(out_r), np.asarray(ref_r), rtol=2e-2, atol=2e-2)

    print("KERNEL_OK")
</pallas_src>

<mosaic_0001>
module attributes {stable_mosaic.version = 11 : i64} {
  func.func @fused_preclassifier_kernel(%arg0: i32, %arg1: memref<4xf32, #tpu.memory_space<smem>>, %arg2: memref<3x3xf32, #tpu.memory_space<smem>>, %arg3: memref<1x3xf32, #tpu.memory_space<smem>>, %arg4: memref<1x3x16x16xf32, #tpu.memory_space<vmem>>, %arg5: memref<1x3x16x16xf32, #tpu.memory_space<vmem>>, %arg6: memref<2x1x3x16x16xbf16, #tpu.memory_space<vmem>>) attributes {dimension_semantics = [#tpu.dimension_semantics<parallel>], iteration_bounds = array<i64: 2>, scalar_prefetch = 0 : i64, scratch_operands = 0 : i64, tpu.core_type = #tpu.core_type<tc>, window_params = [{transform_indices = @transform_0, window_bounds = array<i64: 4>}, {transform_indices = @transform_1, window_bounds = array<i64: 3, 3>}, {transform_indices = @transform_2, window_bounds = array<i64: 1, 3>}, {transform_indices = @transform_3, window_bounds = array<i64: 1, 3, 16, 16>}, {transform_indices = @transform_4, window_bounds = array<i64: 1, 3, 16, 16>}, {transform_indices = @transform_5, window_bounds = array<i64: 2, 1, 3, 16, 16>}]} {
    %c0 = arith.constant 0 : index
    %0 = memref.load %arg1[%c0] : memref<4xf32, #tpu.memory_space<smem>>
    %c1 = arith.constant 1 : index
    %1 = memref.load %arg1[%c1] : memref<4xf32, #tpu.memory_space<smem>>
    %c2 = arith.constant 2 : index
    %2 = memref.load %arg1[%c2] : memref<4xf32, #tpu.memory_space<smem>>
    %c3 = arith.constant 3 : index
    %3 = memref.load %arg1[%c3] : memref<4xf32, #tpu.memory_space<smem>>
    %c0_0 = arith.constant 0 : index
    %c0_1 = arith.constant 0 : index
    %c0_2 = arith.constant 0 : index
    %c0_3 = arith.constant 0 : index
    %4 = vector.load %arg4[%c0_0, %c0_1, %c0_2, %c0_3] : memref<1x3x16x16xf32, #tpu.memory_space<vmem>>, vector<1x1x16x16xf32>
    %5 = vector.shape_cast %4 : vector<1x1x16x16xf32> to vector<16x16xf32>
    %cst = arith.constant 2.000000e+00 : f32
    %6 = vector.broadcast %cst : f32 to vector<16x16xf32>
    %7 = arith.mulf %5, %6 : vector<16x16xf32>
    %cst_4 = arith.constant 1.000000e+00 : f32
    %8 = vector.broadcast %cst_4 : f32 to vector<16x16xf32>
    %9 = arith.subf %7, %8 : vector<16x16xf32>
    %10 = vector.broadcast %0 : f32 to vector<16x16xf32>
    %11 = arith.mulf %10, %9 : vector<16x16xf32>
    %c0_5 = arith.constant 0 : index
    %c0_6 = arith.constant 0 : index
    %c0_7 = arith.constant 0 : index
    %c0_8 = arith.constant 0 : index
    %12 = vector.load %arg5[%c0_5, %c0_6, %c0_7, %c0_8] : memref<1x3x16x16xf32, #tpu.memory_space<vmem>>, vector<1x1x16x16xf32>
    %13 = vector.shape_cast %12 : vector<1x1x16x16xf32> to vector<16x16xf32>
    %14 = vector.broadcast %1 : f32 to vector<16x16xf32>
    %15 = arith.mulf %14, %13 : vector<16x16xf32>
    %16 = arith.addf %11, %15 : vector<16x16xf32>
    %c0_9 = arith.constant 0 : index
    %c1_10 = arith.constant 1 : index
    %c0_11 = arith.constant 0 : index
    %c0_12 = arith.constant 0 : index
    %17 = vector.load %arg4[%c0_9, %c1_10, %c0_11, %c0_12] : memref<1x3x16x16xf32, #tpu.memory_space<vmem>>, vector<1x1x16x16xf32>
    %18 = vector.shape_cast %17 : vector<1x1x16x16xf32> to vector<16x16xf32>
    %cst_13 = arith.constant 2.000000e+00 : f32
    %19 = vector.broadcast %cst_13 : f32 to vector<16x16xf32>
    %20 = arith.mulf %18, %19 : vector<16x16xf32>
    %cst_14 = arith.constant 1.000000e+00 : f32
    %21 = vector.broadcast %cst_14 : f32 to vector<16x16xf32>
    %22 = arith.subf %20, %21 : vector<16x16xf32>
    %23 = vector.broadcast %0 : f32 to vector<16x16xf32>
    %24 = arith.mulf %23, %22 : vector<16x16xf32>
    %c0_15 = arith.constant 0 : index
    %c1_16 = arith.constant 1 : index
    %c0_17 = arith.constant 0 : index
    %c0_18 = arith.constant 0 : index
    %25 = vector.load %arg5[%c0_15, %c1_16, %c0_17, %c0_18] : memref<1x3x16x16xf32, #tpu.memory_space<vmem>>, vector<1x1x16x16xf32>
    %26 = vector.shape_cast %25 : vector<1x1x16x16xf32> to vector<16x16xf32>
    %27 = vector.broadcast %1 : f32 to vector<16x16xf32>
    %28 = arith.mulf %27, %26 : vector<16x16xf32>
    %29 = arith.addf %24, %28 : vector<16x16xf32>
    %c0_19 = arith.constant 0 : index
    %c2_20 = arith.constant 2 : index
    %c0_21 = arith.constant 0 : index
    %c0_22 = arith.constant 0 : index
    %30 = vector.load %arg4[%c0_19, %c2_20, %c0_21, %c0_22] : memref<1x3x16x16xf32, #tpu.memory_space<vmem>>, vector<1x1x16x16xf32>
    %31 = vector.shape_cast %30 : vector<1x1x16x16xf32> to vector<16x16xf32>
    %cst_23 = arith.constant 2.000000e+00 : f32
    %32 = vector.broadcast %cst_23 : f32 to vector<16x16xf32>
    %33 = arith.mulf %31, %32 : vector<16x16xf32>
    %cst_24 = arith.constant 1.000000e+00 : f32
    %34 = vector.broadcast %cst_24 : f32 to vector<16x16xf32>
    %35 = arith.subf %33, %34 : vector<16x16xf32>
    %36 = vector.broadcast %0 : f32 to vector<16x16xf32>
    %37 = arith.mulf %36, %35 : vector<16x16xf32>
    %c0_25 = arith.constant 0 : index
    %c2_26 = arith.constant 2 : index
    %c0_27 = arith.constant 0 : index
    %c0_28 = arith.constant 0 : index
    %38 = vector.load %arg5[%c0_25, %c2_26, %c0_27, %c0_28] : memref<1x3x16x16xf32, #tpu.memory_space<vmem>>, vector<1x1x16x16xf32>
    %39 = vector.shape_cast %38 : vector<1x1x16x16xf32> to vector<16x16xf32>
    %40 = vector.broadcast %1 : f32 to vector<16x16xf32>
    %41 = arith.mulf %40, %39 : vector<16x16xf32>
    %42 = arith.addf %37, %41 : vector<16x16xf32>
    %c0_29 = arith.constant 0 : index
    %c0_30 = arith.constant 0 : index
    %43 = memref.load %arg2[%c0_29, %c0_30] : memref<3x3xf32, #tpu.memory_space<smem>>
    %44 = vector.broadcast %43 : f32 to vector<16x16xf32>
    %45 = arith.mulf %16, %44 : vector<16x16xf32>
    %c1_31 = arith.constant 1 : index
    %c0_32 = arith.constant 0 : index
    %46 = memref.load %arg2[%c1_31, %c0_32] : memref<3x3xf32, #tpu.memory_space<smem>>
    %47 = vector.broadcast %46 : f32 to vector<16x16xf32>
    %48 = arith.mulf %29, %47 : vector<16x16xf32>
    %49 = arith.addf %45, %48 : vector<16x16xf32>
    %c2_33 = arith.constant 2 : index
    %c0_34 = arith.constant 0 : index
    %50 = memref.load %arg2[%c2_33, %c0_34] : memref<3x3xf32, #tpu.memory_space<smem>>
    %51 = vector.broadcast %50 : f32 to vector<16x16xf32>
    %52 = arith.mulf %42, %51 : vector<16x16xf32>
    %53 = arith.addf %49, %52 : vector<16x16xf32>
    %c0_35 = arith.constant 0 : index
    %c0_36 = arith.constant 0 : index
    %54 = memref.load %arg3[%c0_35, %c0_36] : memref<1x3xf32, #tpu.memory_space<smem>>
    %55 = vector.broadcast %54 : f32 to vector<16x16xf32>
    %56 = arith.addf %53, %55 : vector<16x16xf32>
    %57 = vector.broadcast %2 : f32 to vector<16x16xf32>
    %58 = arith.mulf %57, %16 : vector<16x16xf32>
    %59 = vector.broadcast %3 : f32 to vector<16x16xf32>
    %60 = arith.mulf %59, %56 : vector<16x16xf32>
    %61 = arith.subf %58, %60 : vector<16x16xf32>
    %cst_37 = arith.constant -1.000000e+00 : f32
    %cst_38 = arith.constant 1.000000e+00 : f32
    %62 = vector.broadcast %cst_37 : f32 to vector<16x16xf32>
    %63 = arith.maximumf %62, %61 : vector<16x16xf32>
    %64 = vector.broadcast %cst_38 : f32 to vector<16x16xf32>
    %65 = arith.minimumf %64, %63 : vector<16x16xf32>
    %cst_39 = arith.constant 1.000000e+00 : f32
    %66 = vector.broadcast %cst_39 : f32 to vector<16x16xf32>
    %67 = arith.addf %65, %66 : vector<16x16xf32>
    %cst_40 = arith.constant 5.000000e-01 : f32
    %68 = vector.broadcast %cst_40 : f32 to vector<16x16xf32>
    %69 = arith.mulf %67, %68 : vector<16x16xf32>
    %c0_41 = arith.constant 0 : index
    %c1_42 = arith.constant 1 : index
    %70 = memref.load %arg2[%c0_41, %c1_42] : memref<3x3xf32, #tpu.memory_space<smem>>
    %71 = vector.broadcast %70 : f32 to vector<16x16xf32>
    %72 = arith.mulf %16, %71 : vector<16x16xf32>
    %c1_43 = arith.constant 1 : index
    %c1_44 = arith.constant 1 : index
    %73 = memref.load %arg2[%c1_43, %c1_44] : memref<3x3xf32, #tpu.memory_space<smem>>
    %74 = vector.broadcast %73 : f32 to vector<16x16xf32>
    %75 = arith.mulf %29, %74 : vector<16x16xf32>
    %76 = arith.addf %72, %75 : vector<16x16xf32>
    %c2_45 = arith.constant 2 : index
    %c1_46 = arith.constant 1 : index
    %77 = memref.load %arg2[%c2_45, %c1_46] : memref<3x3xf32, #tpu.memory_space<smem>>
    %78 = vector.broadcast %77 : f32 to vector<16x16xf32>
    %79 = arith.mulf %42, %78 : vector<16x16xf32>
    %80 = arith.addf %76, %79 : vector<16x16xf32>
    %c0_47 = arith.constant 0 : index
    %c1_48 = arith.constant 1 : index
    %81 = memref.load %arg3[%c0_47, %c1_48] : memref<1x3xf32, #tpu.memory_space<smem>>
    %82 = vector.broadcast %81 : f32 to vector<16x16xf32>
    %83 = arith.addf %80, %82 : vector<16x16xf32>
    %84 = vector.broadcast %2 : f32 to vector<16x16xf32>
    %85 = arith.mulf %84, %29 : vector<16x16xf32>
    %86 = vector.broadcast %3 : f32 to vector<16x16xf32>
    %87 = arith.mulf %86, %83 : vector<16x16xf32>
    %88 = arith.subf %85, %87 : vector<16x16xf32>
    %cst_49 = arith.constant -1.000000e+00 : f32
    %cst_50 = arith.constant 1.000000e+00 : f32
    %89 = vector.broadcast %cst_49 : f32 to vector<16x16xf32>
    %90 = arith.maximumf %89, %88 : vector<16x16xf32>
    %91 = vector.broadcast %cst_50 : f32 to vector<16x16xf32>
    %92 = arith.minimumf %91, %90 : vector<16x16xf32>
    %cst_51 = arith.constant 1.000000e+00 : f32
    %93 = vector.broadcast %cst_51 : f32 to vector<16x16xf32>
    %94 = arith.addf %92, %93 : vector<16x16xf32>
    %cst_52 = arith.constant 5.000000e-01 : f32
    %95 = vector.broadcast %cst_52 : f32 to vector<16x16xf32>
    %96 = arith.mulf %94, %95 : vector<16x16xf32>
    %c0_53 = arith.constant 0 : index
    %c2_54 = arith.constant 2 : index
    %97 = memref.load %arg2[%c0_53, %c2_54] : memref<3x3xf32, #tpu.memory_space<smem>>
    %98 = vector.broadcast %97 : f32 to vector<16x16xf32>
    %99 = arith.mulf %16, %98 : vector<16x16xf32>
    %c1_55 = arith.constant 1 : index
    %c2_56 = arith.constant 2 : index
    %100 = memref.load %arg2[%c1_55, %c2_56] : memref<3x3xf32, #tpu.memory_space<smem>>
    %101 = vector.broadcast %100 : f32 to vector<16x16xf32>
    %102 = arith.mulf %29, %101 : vector<16x16xf32>
    %103 = arith.addf %99, %102 : vector<16x16xf32>
    %c2_57 = arith.constant 2 : index
    %c2_58 = arith.constant 2 : index
    %104 = memref.load %arg2[%c2_57, %c2_58] : memref<3x3xf32, #tpu.memory_space<smem>>
    %105 = vector.broadcast %104 : f32 to vector<16x16xf32>
    %106 = arith.mulf %42, %105 : vector<16x16xf32>
    %107 = arith.addf %103, %106 : vector<16x16xf32>
    %c0_59 = arith.constant 0 : index
    %c2_60 = arith.constant 2 : index
    %108 = memref.load %arg3[%c0_59, %c2_60] : memref<1x3xf32, #tpu.memory_space<smem>>
    %109 = vector.broadcast %108 : f32 to vector<16x16xf32>
    %110 = arith.addf %107, %109 : vector<16x16xf32>
    %111 = vector.broadcast %2 : f32 to vector<16x16xf32>
    %112 = arith.mulf %111, %42 : vector<16x16xf32>
    %113 = vector.broadcast %3 : f32 to vector<16x16xf32>
    %114 = arith.mulf %113, %110 : vector<16x16xf32>
    %115 = arith.subf %112, %114 : vector<16x16xf32>
    %cst_61 = arith.constant -1.000000e+00 : f32
    %cst_62 = arith.constant 1.000000e+00 : f32
    %116 = vector.broadcast %cst_61 : f32 to vector<16x16xf32>
    %117 = arith.maximumf %116, %115 : vector<16x16xf32>
    %118 = vector.broadcast %cst_62 : f32 to vector<16x16xf32>
    %119 = arith.minimumf %118, %117 : vector<16x16xf32>
    %cst_63 = arith.constant 1.000000e+00 : f32
    %120 = vector.broadcast %cst_63 : f32 to vector<16x16xf32>
    %121 = arith.addf %119, %120 : vector<16x16xf32>
    %cst_64 = arith.constant 5.000000e-01 : f32
    %122 = vector.broadcast %cst_64 : f32 to vector<16x16xf32>
    %123 = arith.mulf %121, %122 : vector<16x16xf32>
    %124 = tpu.concatenate %69, %96, %123 in 0 : vector<16x16xf32>, vector<16x16xf32>, vector<16x16xf32> -> vector<48x16xf32>
    %125 = tpu.iota {dimensions = array<i32: 0>} : vector<48x16xi32>
    %126 = tpu.iota {dimensions = array<i32: 1>} : vector<48x16xi32>
    %127 = arith.addi %125, %126 : vector<48x16xi32>
    %c1_i32 = arith.constant 1 : i32
    %128 = vector.broadcast %c1_i32 : i32 to vector<48x16xi32>
    %129 = arith.andi %127, %128 : vector<48x16xi32>
    %c1_i32_65 = arith.constant 1 : i32
    %130 = vector.broadcast %c1_i32_65 : i32 to vector<48x16xi32>
    %131 = arith.cmpi eq, %129, %130 : vector<48x16xi32>
    %c2_i32 = arith.constant 2 : i32
    %132 = vector.broadcast %c2_i32 : i32 to vector<48x16xi32>
    %133 = arith.cmpi slt, %126, %132 : vector<48x16xi32>
    %134 = arith.xori %131, %133 : vector<48x16xi1>
    %cst_66 = arith.constant 0.000000e+00 : f32
    %135 = vector.broadcast %cst_66 : f32 to vector<48x16xf32>
    %136 = arith.select %134, %124, %135 : vector<48x16xi1>, vector<48x16xf32>
    %137 = arith.truncf %136 : vector<48x16xf32> to vector<48x16xbf16>
    %cst_67 = arith.constant 0.000000e+00 : f32
    %138 = vector.broadcast %cst_67 : f32 to vector<48x16xf32>
    %139 = arith.select %134, %138, %124 : vector<48x16xi1>, vector<48x16xf32>
    %140 = arith.truncf %139 : vector<48x16xf32> to vector<48x16xbf16>
    %141 = tpu.iota {dimensions = array<i32: 0>} : vector<16x16xi32>
    %142 = tpu.iota {dimensions = array<i32: 1>} : vector<16x16xi32>
    %c1_i32_68 = arith.constant 1 : i32
    %143 = vector.broadcast %c1_i32_68 : i32 to vector<16x16xi32>
    %144 = arith.shrsi %141, %143 : vector<16x16xi32>
    %c1_i32_69 = arith.constant 1 : i32
    %145 = vector.broadcast %c1_i32_69 : i32 to vector<16x16xi32>
    %146 = arith.shrsi %142, %145 : vector<16x16xi32>
    %147 = arith.cmpi eq, %144, %146 : vector<16x16xi32>
    %148 = arith.extui %147 : vector<16x16xi1> to vector<16x16xi32>
    %149 = arith.sitofp %148 : vector<16x16xi32> to vector<16x16xf32>
    %150 = arith.truncf %149 : vector<16x16xf32> to vector<16x16xbf16>
    %151 = tpu.concatenate %137, %140 in 0 : vector<48x16xbf16>, vector<48x16xbf16> -> vector<96x16xbf16>
    %cst_70 = arith.constant dense<0.000000e+00> : vector<96x16xf32>
    %152 = tpu.matmul %151, %150, %cst_70 {dimension_numbers = #tpu.dot_dimension_numbers<[1], [0], [0], [1], [0, 0, 1, 1], [], []>} : vector<96x16xbf16>, vector<16x16xbf16>, vector<96x16xf32> -> vector<96x16xf32>
    %153 = vector.extract_strided_slice %152 {offsets = [0, 0], sizes = [48, 16], strides = [1, 1]} : vector<96x16xf32> to vector<48x16xf32>
    %154 = vector.shape_cast %153 : vector<48x16xf32> to vector<3x16x16xf32>
    %155 = arith.truncf %154 : vector<3x16x16xf32> to vector<3x16x16xbf16>
    %c0_71 = arith.constant 0 : index
    %c0_72 = arith.constant 0 : index
    %c0_73 = arith.constant 0 : index
    %c0_74 = arith.constant 0 : index
    %c0_75 = arith.constant 0 : index
    %156 = vector.load %arg6[%c0_71, %c0_72, %c0_73, %c0_74, %c0_75] : memref<2x1x3x16x16xbf16, #tpu.memory_space<vmem>>, vector<1x1x3x16x16xbf16>
    %157 = vector.shape_cast %156 : vector<1x1x3x16x16xbf16> to vector<3x16x16xbf16>
    %158 = vector.shape_cast %155 : vector<3x16x16xbf16> to vector<1x1x3x16x16xbf16>
    tpu.vector_store %arg6[%c0_71, %c0_72, %c0_73, %c0_74, %c0_75], %158 {strides = array<i32>} : memref<2x1x3x16x16xbf16, #tpu.memory_space<vmem>>, vector<1x1x3x16x16xbf16>,
    %159 = vector.extract_strided_slice %152 {offsets = [48, 0], sizes = [48, 16], strides = [1, 1]} : vector<96x16xf32> to vector<48x16xf32>
    %160 = vector.shape_cast %159 : vector<48x16xf32> to vector<3x16x16xf32>
    %161 = arith.truncf %160 : vector<3x16x16xf32> to vector<3x16x16xbf16>
    %c1_76 = arith.constant 1 : index
    %c0_77 = arith.constant 0 : index
    %c0_78 = arith.constant 0 : index
    %c0_79 = arith.constant 0 : index
    %c0_80 = arith.constant 0 : index
    %162 = vector.load %arg6[%c1_76, %c0_77, %c0_78, %c0_79, %c0_80] : memref<2x1x3x16x16xbf16, #tpu.memory_space<vmem>>, vector<1x1x3x16x16xbf16>
    %163 = vector.shape_cast %162 : vector<1x1x3x16x16xbf16> to vector<3x16x16xbf16>
    %164 = vector.shape_cast %161 : vector<3x16x16xbf16> to vector<1x1x3x16x16xbf16>
    tpu.vector_store %arg6[%c1_76, %c0_77, %c0_78, %c0_79, %c0_80], %164 {strides = array<i32>} : memref<2x1x3x16x16xbf16, #tpu.memory_space<vmem>>, vector<1x1x3x16x16xbf16>,
    return
  }
  func.func @transform_0(%arg0: i32) -> i32 {
    %c0_i32 = arith.constant 0 : i32
    %c0_i32_0 = arith.constant 0 : i32
    return %c0_i32 : i32
  }
  func.func @transform_1(%arg0: i32) -> (i32, i32) {
    %c0_i32 = arith.constant 0 : i32
    %c0_i32_0 = arith.constant 0 : i32
    %c0_i32_1 = arith.constant 0 : i32
    return %c0_i32, %c0_i32_0 : i32, i32
  }
  func.func @transform_2(%arg0: i32) -> (i32, i32) {
    %c0_i32 = arith.constant 0 : i32
    %c0_i32_0 = arith.constant 0 : i32
    %c0_i32_1 = arith.constant 0 : i32
    return %c0_i32, %c0_i32_0 : i32, i32
  }
  func.func @transform_3(%arg0: i32) -> (i32, i32, i32, i32) {
    %c0_i32 = arith.constant 0 : i32
    %c0_i32_0 = arith.constant 0 : i32
    %c0_i32_1 = arith.constant 0 : i32
    %c0_i32_2 = arith.constant 0 : i32
    return %arg0, %c0_i32, %c0_i32_0, %c0_i32_1 : i32, i32, i32, i32
  }
  func.func @transform_4(%arg0: i32) -> (i32, i32, i32, i32) {
    %c0_i32 = arith.constant 0 : i32
    %c0_i32_0 = arith.constant 0 : i32
    %c0_i32_1 = arith.constant 0 : i32
    %c0_i32_2 = arith.constant 0 : i32
    return %arg0, %c0_i32, %c0_i32_0, %c0_i32_1 : i32, i32, i32, i32
  }
  func.func @transform_5(%arg0: i32) -> (i32, i32, i32, i32, i32) {
    %c0_i32 = arith.constant 0 : i32
    %c0_i32_0 = arith.constant 0 : i32
    %c0_i32_1 = arith.constant 0 : i32
    %c0_i32_2 = arith.constant 0 : i32
    %c0_i32_3 = arith.constant 0 : i32
    return %c0_i32, %arg0, %c0_i32_0, %c0_i32_1, %c0_i32_2 : i32, i32, i32, i32, i32
  }
}

</mosaic_0001>

<bundles_post_ra>
// kernel: tpu_custom_call.1
= control target key start
LH: loop header
LB: loop body
LE: loop exit
PB: predicated region body
PF: predicated region fallthrough
CT: control target
= control target key end

     0   :  { %s1837_s0 = inlined_call_operand.hbm [shape: f32[4], index: 0, kind: input, shape index: {}]   ;;  %s1838_s1 = inlined_call_operand.hbm [shape: f32[3,3], index: 1, kind: input, shape index: {}]   ;;  %s1839_s2 = inlined_call_operand.vmem [shape: f32[1,3], index: 2, kind: input, shape index: {}]   ;;  %s1840_s3 = inlined_call_operand.hbm [shape: f32[2,3,16,16], index: 3, kind: input, shape index: {}]   ;;  %s1841_s4 = inlined_call_operand.hbm [shape: f32[2,3,16,16], index: 4, kind: input, shape index: {}]   ;;  %s1842_s5 = inlined_call_operand.hbm [shape: bf16[2,2,3,16,16], index: 5, kind: output, shape index: {}]  }
   0x1   :  { %1846 = sst [smem:[#allocation22_spill]] %s1837_s0 }
   0x2   :  { %1847 = sst [smem:[#allocation23_spill]] %s1838_s1 }
   0x3   :  { %10 = vsyncpa [#allocation5], 0 }
   0x4   :  { %11 = vsyncpa [#allocation8], 0 }
   0x5   :  { %12 = vsyncpa [#allocation6], 0 }
   0x6   :  { %13 = vsyncpa [#allocation3], 0 }
   0x7   :  { %15 = vsyncpa [#allocation3 + $0x1], 0 }
   0x8   :  { %16 = vsyncpa [#allocation12], 0 }
   0x9   :  { %18 = vsyncpa [#allocation12 + $0x1], 0 }
   0xa   :  { %19 = vsyncpa [#allocation4], 0 }
   0xb   :  { %21 = vsyncpa [#allocation4 + $0x1], 0  ;;  %s1290_s18 = smov 0   ;;  %s1292_s19 = smov 0  }
   0xc   :  { %s1294_s20 = smov 0   ;;  %s1296_s21 = smov 0  }
   0xd LB: > { %s1311_s22 = sadd.s32 4294967295, %s1243_s21   ;;  %s873_s23 = sadd.s32 4294967294, %s1243_s21   ;;  %s1243_s21 = sphi %s1296_s21, %s1889_s21   ;;  %s1239_s20 = sphi %s1294_s20, %s1888_s20   ;;  %s1235_s19 = sphi %s1292_s19, %s1887_s19   ;;  %s1231_s18 = sphi %s1290_s18, %s1886_s18  }
   0xe   : > { %p110_p0 = scmp.ne.s32.totalorder %s1235_s19, %s1231_s18  ;;  %p1843_p1 = scmp.eq.s32.totalorder %s1311_s22, 0 }
   0xf   : > { %p160_p2 = scmp.eq.s32.totalorder %s1311_s22, 1  ;;  %p166_p3 = scmp.eq.s32.totalorder %s873_s23, 1 }
  0x10   : > { %p1320_p4 = por %p1843_p1, %p110_p0  ;;  %p874_p5 = scmp.ge.s32.totalorder %s1243_s21, 1 }
  0x11   : > { %p1325_p6 = por %p166_p3, %p110_p0  ;;  %p173_p7 = scmp.lt.s32.totalorder %s1243_s21, 3 }
  0x12   : > { %s1848_s24 = scalar_select %p1320_p4, 1, 0 }
  0x13   : > { %s1849_s25 = scalar_select %p1325_p6, 1, 0 }
  0x14   : > { %p1330_p8 = pnand %p874_p5, %p173_p7  ;;  %s204_s29 = sshll.u32 %s1839_s2, 4  ;;  %s1340_s29 = int_to_ptr.vmem [resolvable:$true] %s204_s29 }
  0x15   : > { %s1349_s6 = sadd.s32 1, %s1243_s21   ;;  %s97_s7 = sadd.s32 1, %s1239_s20 }
  0x16   : > { %p1014_p10 = pneg %p1330_p8  ;;  %s94_s8 = ssub.s32 %s1243_s21, %s1349_s6 }
  0x17   : > { %s1852_s0 = sld [smem:[#allocation22_spill]] }
  0x18   : > { %p1344_p11 = pnand %p1014_p10, %p1843_p1 }
  0x1a   : > { %p1090_p13 = pneg %p1344_p11 }
  0x1d   : > { %s1088_s11 = scalar_lea.hbm %s1852_s0, 16 }
  0x1e   : > { %p1089_p12 = scmp.ne.s32.totalorder %s1852_s0, %s1088_s11  ;;  %p1095_p5 = scmp.lt.u32.totalorder %s1088_s11, %s1852_s0 }
  0x20   : > { %p1091_p0 = pnand %p1090_p13, %p1089_p12 }
  0x22   : > { %p1092_p3 = pneg %p1091_p0 }
  0x24   : > { %p1097_p7 = pnand %p1095_p5, %p1092_p3 }
  0x26   : > { %1100 = shalt.err (!%p1097_p7)
}
  0x27   : > { %s1245_s16 = smov [#allocation2]   ;;  %s1853_s1 = sld [smem:[#allocation23_spill]] }
  0x28   : > { %1017 = dma.hbm_to_smem (!%p1344_p11), %s1852_s0, 16, %s1245_s16, [#allocation5]  }
  0x2d   : > { %s1101_s9 = scalar_lea.hbm %s1853_s1, 64 }
  0x2e   : > { %p1102_p10 = scmp.ne.s32.totalorder %s1853_s1, %s1101_s9  ;;  %p1108_p3 = scmp.lt.u32.totalorder %s1101_s9, %s1853_s1 }
  0x30   : > { %p1104_p12 = pnand %p1102_p10, %p1090_p13 }
  0x32   : > { %p1105_p0 = pneg %p1104_p12 }
  0x34   : > { %p1110_p5 = pnand %p1108_p3, %p1105_p0 }
  0x36   : > { %1113 = shalt.err (!%p1110_p5)
}
  0x37   : > { %s1246_s14 = smov [#allocation7]   ;;  %s1114_s17 = scalar_lea.vmem %s1340_s29, 16 }
  0x38   : > { %1020 = dma.hbm_to_smem (!%p1344_p11), %s1853_s1, 64, %s1246_s14, [#allocation8]  }
  0x39   : > { %p1115_p7 = scmp.ne.s32.totalorder %s1340_s29, %s1114_s17  ;;  %p1122_p0 = scmp.lt.s32.totalorder %s1340_s29, %s1340_s29 }
  0x3a   : > { %p1123_p3 = scmp.lt.s32.totalorder %s1114_s17, %s1114_s17 }
  0x3b   : > { %p1117_p10 = pnand %p1115_p7, %p1090_p13 }
  0x3c   : > { %p1124_p5 = por %p1123_p3, %p1122_p0 }
  0x3d   : > { %p1118_p12 = pneg %p1117_p10 }
  0x3f   : > { %p1125_p9 = pnand %p1124_p5, %p1118_p12 }
  0x41   : > { %1128 = shalt.err (!%p1125_p9)
}
  0x42   : > { %s1247_s23 = smov [#allocation9]   ;;  %p95_p13 = scmp.eq.s32.totalorder %s94_s8, 0 }
  0x43   : > { %1023 = dma.vmem_to_smem (!%p1344_p11), %s1340_s29, 16, %s1247_s23, [#allocation6]  }
  0x44   : > { %p104_p9 = scmp.ne.s32.totalorder %s1239_s20, %s1235_s19  ;;  %p105_p7 = scmp.eq.s32.totalorder %s1243_s21, 0 }
  0x45   : > { %p1038_p10 = scmp.lt.s32.totalorder %s1243_s21, 2  ;;  %s1419_s28 = sand.u32 1, %s1239_s20  }
  0x46   : > { %s1410_s30 = scalar_select %p95_p13, %s1239_s20, %s97_s7  }
  0x47   : > { %p106_p12 = por %p105_p7, %p104_p9  ;;  %p1414_p0 = por %p160_p2, %p104_p9 }
  0x48   : > { %s985_s29 = smul.u32 768, %s1243_s21  ;;  %s216_s14 = scalar_lea.sflag [#allocation3], %s1419_s28 }
  0x49   : > { %s1854_s27 = scalar_select %p1414_p0, 1, 0 }
  0x4a   : > { %s984_s9 = smul.u32 48, %s1419_s28  ;;  %s1428_s12 = scalar_lea.hbm %s1840_s3, %s985_s29 }
  0x4b   : > { %p1430_p2 = pnand %p1038_p10, %p106_p12  ;;  %s1129_s15 = scalar_lea.hbm %s1428_s12, 768 }
  0x4c   : > { %s219_s11 = scalar_lea.vmem [#allocation10], %s984_s9  ;;  %p1130_p11 = scmp.ne.s32.totalorder %s1428_s12, %s1129_s15 }
  0x4d   : > { %s226_s13 = sshll.u32 %s219_s11, 4  ;;  %p1131_p3 = pneg %p1430_p2  ;;  %s1436_s13 = int_to_ptr.vmem [resolvable:$true] %s226_s13 }
  0x4e   : > { %s1134_s23 = scalar_lea.hbm %s1840_s3, 1536  ;;  %p1135_p9 = scmp.lt.u32.totalorder %s1428_s12, %s1840_s3 }
  0x4f   : > { %p1132_p5 = pnand %p1131_p3, %p1130_p11  ;;  %p1136_p7 = scmp.lt.u32.totalorder %s1134_s23, %s1129_s15 }
  0x50   : > { %p1138_p12 = scmp.lt.u32.totalorder %s1129_s15, %s1428_s12 }
  0x51   : > { %p1133_p13 = pneg %p1132_p5  ;;  %p1137_p10 = por %p1136_p7, %p1135_p9 }
  0x53   : > { %p1139_p1 = por %p1138_p12, %p1137_p10 }
  0x55   : > { %p1140_p6 = pnand %p1139_p1, %p1133_p13 }
  0x57   : > { %1143 = shalt.err (!%p1140_p6)
}
  0x58   : > { %s1144_s11 = scalar_lea.vmem %s1436_s13, 768  ;;  %s1248_s16 = smov [#allocation10]  }
  0x59   : > { %p1145_p11 = scmp.ne.s32.totalorder %s1436_s13, %s1144_s11  ;;  %s1149_s17 = sshll.u32 %s1248_s16, 4  ;;  %s1150_s17 = int_to_ptr.vmem [resolvable:$false] %s1149_s17 }
  0x5a   : > { %s1151_s8 = scalar_lea.vmem %s1150_s17, 1536  ;;  %p1152_p4 = scmp.lt.s32.totalorder %s1436_s13, %s1150_s17 }
  0x5b   : > { %p1147_p5 = pnand %p1145_p11, %p1131_p3  ;;  %p1153_p9 = scmp.lt.s32.totalorder %s1151_s8, %s1144_s11 }
  0x5d   : > { %p1148_p0 = pneg %p1147_p5  ;;  %p1154_p7 = por %p1153_p9, %p1152_p4 }
  0x5f   : > { %p1155_p10 = pnand %p1154_p7, %p1148_p0 }
  0x61   : > { %1158 = shalt.err (!%p1155_p10)
}
  0x62   : > { %s1249_s15 = smov 128   ;;  %s1250_s23 = smov 8  }
  0x63   : > { %1027 = dma.hbm_to_vmem [thread:$0]  (!%p1430_p2), %s1428_s12, 768, %s1436_s13, %s216_s14, %s1249_s15, %s1249_s15, %s1250_s23  }
  0x64   : > { %s1474_s16 = scalar_lea.hbm %s1841_s4, %s985_s29  ;;  %s240_s17 = scalar_lea.vmem [#allocation11], %s984_s9 }
  0x65   : > { %s247_s8 = sshll.u32 %s240_s17, 4  ;;  %s237_s0 = scalar_lea.sflag [#allocation12], %s1419_s28  ;;  %s1478_s8 = int_to_ptr.vmem [resolvable:$true] %s247_s8 }
  0x66   : > { %s1159_s1 = scalar_lea.hbm %s1474_s16, 768  ;;  %s1164_s29 = scalar_lea.hbm %s1841_s4, 1536 }
  0x67   : > { %p1160_p1 = scmp.ne.s32.totalorder %s1474_s16, %s1159_s1  ;;  %p1165_p0 = scmp.lt.u32.totalorder %s1474_s16, %s1841_s4 }
  0x68   : > { %p1166_p13 = scmp.lt.u32.totalorder %s1164_s29, %s1159_s1  ;;  %p1168_p11 = scmp.lt.u32.totalorder %s1159_s1, %s1474_s16 }
  0x69   : > { %p1162_p4 = pnand %p1160_p1, %p1131_p3 }
  0x6a   : > { %p1167_p12 = por %p1166_p13, %p1165_p0 }
  0x6b   : > { %p1163_p6 = pneg %p1162_p4 }
  0x6c   : > { %p1169_p5 = por %p1168_p11, %p1167_p12 }
  0x6e   : > { %p1170_p9 = pnand %p1169_p5, %p1163_p6 }
  0x70   : > { %1173 = shalt.err (!%p1170_p9)
}
  0x71   : > { %s1174_s9 = scalar_lea.vmem %s1478_s8, 768  ;;  %s1251_s11 = smov [#allocation11]  }
  0x72   : > { %p1175_p7 = scmp.ne.s32.totalorder %s1478_s8, %s1174_s9  ;;  %s1179_s17 = sshll.u32 %s1251_s11, 4  ;;  %s1180_s17 = int_to_ptr.vmem [resolvable:$false] %s1179_s17 }
  0x73   : > { %s1181_s12 = scalar_lea.vmem %s1180_s17, 1536  ;;  %p1182_p4 = scmp.lt.s32.totalorder %s1478_s8, %s1180_s17 }
  0x74   : > { %p1177_p10 = pnand %p1175_p7, %p1131_p3  ;;  %p1183_p0 = scmp.lt.s32.totalorder %s1181_s12, %s1174_s9 }
  0x76   : > { %p1178_p1 = pneg %p1177_p10  ;;  %p1184_p13 = por %p1183_p0, %p1182_p4 }
  0x78   : > { %p1185_p12 = pnand %p1184_p13, %p1178_p1 }
  0x7a   : > { %1188 = shalt.err (!%p1185_p12)
}
  0x7b   : > { %1030 = dma.hbm_to_vmem [thread:$0]  (!%p1430_p2), %s1474_s16, 768, %s1478_s8, %s237_s0, %s1249_s15, %s1249_s15, %s1250_s23  }
  0x7c   : > { %259 = sbr.rel (%p1330_p8) target bundleno = 428 (0x1ac), region = 40  ;;  %p1856_p3 = scmp.eq.s32.totalorder (!%p1330_p8), %s1311_s22, 0 }
  0x83   : > { %1206 = dma.done.wait (%p1856_p3), [#allocation5], 16   ;;  %p1857_p6 = pmov %p1856_p3 }
  0x84   : > { %p1858_p11 = pmov %p1856_p3 }
  0x85   : > { %1208 = vsyncadd (%p1857_p6), [#allocation5], 4294967280 }
  0x86   : > { %1210 = dma.done.wait (%p1858_p11), [#allocation8], 64   ;;  %p1859_p5 = pmov %p1856_p3 }
  0x87   : > { %p1860_p9 = pmov %p1856_p3 }
  0x88   : > { %1212 = vsyncadd (%p1859_p5), [#allocation8], 4294967232 }
  0x89   : > { %1214 = dma.done.wait (%p1860_p9), [#allocation6], 16   ;;  %p1861_p2 = pmov %p1856_p3 }
  0x8a   : > { %s1524_s0 = sand.u32 1, %s1235_s19   ;;  %p1862_p8 = scmp.ne.s32.totalorder %s1848_s24, 0 }
  0x8b   : > { %1216 = vsyncadd (%p1861_p2), [#allocation6], 4294967280  ;;  %s1527_s1 = smul.u32 48, %s1524_s0  ;;  %s274_s26 = scalar_lea.sflag [#allocation3], %s1524_s0 }
  0x8d   : > { %s1531_s28 = scalar_lea.vmem [#allocation10], %s1527_s1 }
  0x8e   : > { %1218 = dma.done.wait (%p1862_p8), %s274_s26, 768  }
  0x8f   : > { %1220 = vsyncadd (%p1862_p8), %s274_s26, 4294966528  ;;  %s283_s7 = scalar_lea.sflag [#allocation12], %s1524_s0  ;;  %s1539_s15 = scalar_lea.vmem [#allocation11], %s1527_s1 }
  0x90   : > { %1222 = dma.done.wait (%p1862_p8), %s283_s7, 768  }
  0x91   : > { %1224 = vsyncadd (%p1862_p8), %s283_s7, 4294966528 }
  0x92   : > { %291 = sfence }
  0x93   : > { %v476_v0 = vlaneseq  ;;  %s320_s23 = sld [smem:[#allocation2]]  ;;  %s1545_s16 = sld [smem:[#allocation2 + $0x1]]  ;;  %v324_v1 = vld [vmem:[%s1531_s28] sm:$0xff]  ;;  %v325_v2 = vld [vmem:[%s1531_s28 + $0x8] sm:$0xff]  ;;  %v890_v8 = vld [vmem:[%s1531_s28 + $0x10] sm:$0xff]  ;;  %vm538_vm6 = vcmask 130048  }
  0x94   : > { %v326_v5 = vmul.f32 2.0, %v324_v1  ;;  %v327_v6 = vmul.f32 2.0, %v325_v2  ;;  %v333_v7 = vld [vmem:[%s1539_s15] sm:$0xff]  ;;  %v891_v9 = vld [vmem:[%s1531_s28 + $0x18] sm:$0xff]  ;;  %s1556_s24 = sld [smem:[#allocation7 + $0x2]]  ;;  %v334_v14 = vld [vmem:[%s1539_s15 + $0x8] sm:$0xff] }
  0x95   : > { %v1549_v3 = vshrl.u32 %v476_v0, 7  ;;  %v1551_v4 = vand.u32 127, %v476_v0  ;;  %v896_v15 = vld [vmem:[%s1531_s28 + $0x20] sm:$0xff]  ;;  %v343_v17 = vmul.f32 2.0, %v890_v8  ;;  %v344_v18 = vmul.f32 2.0, %v891_v9  ;;  %v894_v19 = vld [vmem:[%s1539_s15 + $0x10] sm:$0xff] }
  0x96   : > { %v888_v13 = vadd.f32 -1.0, %v326_v5  ;;  %v889_v16 = vadd.f32 -1.0, %v327_v6  ;;  %v895_v20 = vld [vmem:[%s1539_s15 + $0x18] sm:$0xff]  ;;  %v897_v21 = vld [vmem:[%s1531_s28 + $0x28] sm:$0xff]  ;;  %v359_v25 = vmul.f32 2.0, %v896_v15  ;;  %s1570_s8 = sld [smem:[#allocation7 + $0x82]] }
  0x97   : > { %v478_v10 = vadd.s32 8, %v1549_v3  ;;  %v528_v11 = vshra.s32 %v1549_v3, 1  ;;  %v530_v12 = vshra.s32 %v1551_v4, 1  ;;  %s1572_s13 = sld [smem:[#allocation7 + $0x102]]  ;;  %v892_v29 = vadd.f32 -1.0, %v343_v17  ;;  %s1577_s14 = sld [smem:[#allocation2 + $0x3]] }
  0x98   : > { %s1574_s29 = sld [smem:[#allocation2 + $0x2]]  ;;  %v893_v32 = vadd.f32 -1.0, %v344_v18  ;;  %v900_v33 = vld [vmem:[%s1539_s15 + $0x20] sm:$0xff]  ;;  %v901_v34 = vld [vmem:[%s1539_s15 + $0x28] sm:$0xff]  ;;  %v360_v39 = vmul.f32 2.0, %v897_v21  ;;  %v898_v44 = vadd.f32 -1.0, %v359_v25 }
  0x99   : > { %v529_v22 = vshra.s32 %v478_v10, 1  ;;  %vm1566_vm0 = vcmp.eq.s32.totalorder %v528_v11, %v530_v12  ;;  %v330_v24 = vstv %s320_s23  ;;  %v335_v28 = vstv %s1545_s16  ;;  %s1587_s10 = sld [smem:[#allocation9 + $0x2]]  ;;  %s1595_s9 = sld [smem:[#allocation7]] }
  0x9a   : > { %v331_v26 = vmul.f32 %v888_v13, %v330_v24  ;;  %v332_v27 = vmul.f32 %v889_v16, %v330_v24  ;;  %v336_v30 = vmul.f32 %v335_v28, %v333_v7  ;;  %v337_v31 = vmul.f32 %v335_v28, %v334_v14  ;;  %s1610_s11 = sld [smem:[#allocation7 + $0x80]]  ;;  %s1643_s26 = sld [smem:[#allocation7 + $0x1]] }
  0x9b   : > { %vm532_vm1 = vcmp.eq.s32.totalorder %v529_v22, %v530_v12  ;;  %v347_v36 = vmul.f32 %v892_v29, %v330_v24  ;;  %v352_v37 = vmul.f32 %v894_v19, %v335_v28  ;;  %v353_v38 = vmul.f32 %v895_v20, %v335_v28  ;;  %s1612_s17 = sld [smem:[#allocation7 + $0x100]]  ;;  %s1645_s28 = sld [smem:[#allocation7 + $0x81]] }
  0x9c   : > { %vm1583_vm2 = vmpackc.low %vm532_vm1, %vm1566_vm0  ;;  %v1252_v40 = vmov 1.0|1.0   ;;  %v1591_v41 = vadd.f32 %v336_v30, %v331_v26  ;;  %v1593_v42 = vadd.f32 %v337_v31, %v332_v27  ;;  %v348_v43 = vmul.f32 %v893_v32, %v330_v24  ;;  %s1634_s12 = sld [smem:[#allocation9]]  ;;  %s1659_s7 = sld [smem:[#allocation7 + $0x101]] }
  0x9d   : > { %982 = vmatprep.subr.msk.bf16.mxu1 %vm1583_vm2, %v1252_v40  ;;  %968 = vmatprep.subr.msk.bf16.mxu0 %vm1583_vm2, %v1252_v40  ;;  %v1601_v45 = vadd.f32 %v352_v37, %v347_v36  ;;  %v899_v46 = vadd.f32 -1.0, %v360_v39  ;;  %v368_v47 = vmul.f32 %v900_v33, %v335_v28  ;;  %v369_v48 = vmul.f32 %v901_v34, %v335_v28  ;;  %s1675_s15 = sld [smem:[#allocation9 + $0x1]]  ;;  %s1773_s23 = scalar_lea.vmem [#allocation13], %s1527_s1 }
  0x9e   : > { %983 = vmatpush3.bf16.msk.msra.mxu1 %vm1583_vm2, %v1252_v40  ;;  %969 = vmatpush3.bf16.msk.msra.mxu0 %vm1583_vm2, %v1252_v40  ;;  %v1606_v49 = vadd.s32 %v1551_v4, %v478_v10  ;;  %v1608_v50 = vadd.f32 %v353_v38, %v348_v43  ;;  %v363_v51 = vmul.f32 %v898_v44, %v330_v24  ;;  %v443_v53 = vstv %s1556_s24  ;;  %s701_s1 = scalar_lea.sflag [#allocation4], %s1524_s0 }
  0x9f   : > { %v364_v52 = vmul.f32 %v899_v46, %v330_v24  ;;  %v447_v54 = vstv %s1570_s8  ;;  %v453_v55 = vstv %s1572_s13  ;;  %v444_v57 = vmul.f32 %v443_v53, %v1591_v41 }
  0xa0   : > { %v1617_v56 = vadd.f32 %v368_v47, %v363_v51  ;;  %v445_v58 = vmul.f32 %v443_v53, %v1593_v42  ;;  %v448_v59 = vmul.f32 %v447_v54, %v1601_v45  ;;  %v1625_v61 = vstv %s1574_s29 }
  0xa1   : > { %v1622_v60 = vadd.f32 %v369_v48, %v364_v52  ;;  %v449_v62 = vmul.f32 %v447_v54, %v1608_v50  ;;  %v481_v63 = vadd.s32 32, %v1549_v3  ;;  %v1630_v0 = vstv %s1577_s14 }
  0xa2   : > { %v450_v1 = vadd.f32 %v448_v59, %v444_v57  ;;  %v454_v2 = vmul.f32 %v453_v55, %v1617_v56  ;;  %v482_v5 = vadd.s32 40, %v1549_v3  ;;  %v459_v8 = vstv %s1587_s10 }
  0xa3   : > { %v451_v6 = vadd.f32 %v449_v62, %v445_v58  ;;  %v455_v7 = vmul.f32 %v453_v55, %v1622_v60  ;;  %v489_v9 = vadd.s32 %v1551_v4, %v481_v63  ;;  %v462_v11 = vmul.f32 %v1625_v61, %v1617_v56 }
  0xa4   : > { %v456_v10 = vadd.f32 %v454_v2, %v450_v1  ;;  %v490_v12 = vadd.s32 %v1551_v4, %v482_v5  ;;  %v373_v13 = vstv %s1595_s9  ;;  %v377_v20 = vstv %s1610_s11 }
  0xa5   : > { %v457_v14 = vadd.f32 %v455_v7, %v451_v6  ;;  %v495_v15 = vand.u32 1, %v489_v9  ;;  %v374_v16 = vmul.f32 %v373_v13, %v1591_v41  ;;  %v375_v17 = vmul.f32 %v373_v13, %v1593_v42 }
  0xa6   : > { %v460_v18 = vadd.f32 %v459_v8, %v456_v10  ;;  %v496_v19 = vand.u32 1, %v490_v12  ;;  %v383_v21 = vstv %s1612_s17  ;;  %v463_v23 = vmul.f32 %v1625_v61, %v1622_v60 }
  0xa7   : > { %v461_v22 = vadd.f32 %v459_v8, %v457_v14  ;;  %v378_v24 = vmul.f32 %v377_v20, %v1601_v45  ;;  %v379_v25 = vmul.f32 %v377_v20, %v1608_v50  ;;  %vm503_vm3 = vcmp.lt.s32.totalorder %v1551_v4, 2 }
  0xa8   : > { %v464_v26 = vmul.f32 %v460_v18, %v1630_v0  ;;  %v384_v27 = vmul.f32 %v383_v21, %v1617_v56  ;;  %v385_v28 = vmul.f32 %v383_v21, %v1622_v60  ;;  %vm1662_vm4 = vcmp.eq.s32.totalorder %v495_v15, 1 }
  0xa9   : > { %v465_v29 = vmul.f32 %v461_v22, %v1630_v0  ;;  %v380_v31 = vadd.f32 %v378_v24, %v374_v16  ;;  %v381_v32 = vadd.f32 %v379_v25, %v375_v17  ;;  %vm1666_vm5 = vcmp.eq.s32.totalorder %v496_v19, 1  ;;  %vm1688_vm7 = vmxor %vm1662_vm4, %vm503_vm3 }
  0xaa   : > { %v466_v33 = vsub.f32 %v462_v11, %v464_v26  ;;  %v389_v35 = vstv %s1634_s12  ;;  %v485_v36 = vadd.s32 %v1551_v4, %v1549_v3  ;;  %v393_v40 = vmul.f32 %v1625_v61, %v1591_v41  ;;  %vm1701_vm8 = vmxor %vm1666_vm5, %vm503_vm3 }
  0xab   : > { %v467_v37 = vsub.f32 %v463_v23, %v465_v29  ;;  %v386_v38 = vadd.f32 %v384_v27, %v380_v31  ;;  %v387_v39 = vadd.f32 %v385_v28, %v381_v32  ;;  %v492_v44 = vand.u32 1, %v1606_v49 }
  0xac   : > { %v916_v43 = vclamps-f32 %v466_v33, 1.0  ;;  %v409_v46 = vstv %s1643_s26  ;;  %v413_v47 = vstv %s1645_s28  ;;  %v394_v53 = vmul.f32 %v1625_v61, %v1593_v42 }
  0xad   : > { %v917_v48 = vclamps-f32 %v467_v37, 1.0  ;;  %v390_v51 = vadd.f32 %v389_v35, %v386_v38  ;;  %v391_v52 = vadd.f32 %v389_v35, %v387_v39  ;;  %v491_v55 = vand.u32 1, %v485_v36 }
  0xae   : > { %v472_v54 = vadd.f32 1.0, %v916_v43  ;;  %v410_v57 = vmul.f32 %v409_v46, %v1591_v41  ;;  %v411_v58 = vmul.f32 %v409_v46, %v1593_v42  ;;  %v414_v1 = vmul.f32 %v413_v47, %v1601_v45 }
  0xaf   : > { %v473_v59 = vadd.f32 1.0, %v917_v48  ;;  %v396_v62 = vmul.f32 %v1630_v0, %v390_v51  ;;  %v397_v63 = vmul.f32 %v1630_v0, %v391_v52  ;;  %vm1705_vm9 = vcmp.eq.s32.totalorder %v492_v44, 1 }
  0xb0   : > { %v1695_v2 = vmul.f32 0.5, %v472_v54  ;;  %v415_v5 = vmul.f32 %v413_v47, %v1608_v50  ;;  %v419_v6 = vstv %s1659_s7  ;;  %v416_v10 = vadd.f32 %v414_v1, %v410_v57  ;;  %vm1727_vm11 = vmxor %vm1705_vm9, %vm503_vm3 }
  0xb1   : > { %v475_v7 = vmul.f32 0.5, %v473_v59  ;;  %v398_v8 = vsub.f32 %v393_v40, %v396_v62  ;;  %v399_v9 = vsub.f32 %v394_v53, %v397_v63  ;;  %vm1714_vm10 = vcmp.eq.s32.totalorder %v491_v55, 1 }
  0xb2   : > { %v514_v11 = vsel %vm1688_vm7, %v1695_v2, 0.0  ;;  %v417_v13 = vadd.f32 %v415_v5, %v411_v58  ;;  %v420_v14 = vmul.f32 %v419_v6, %v1617_v56  ;;  %v425_v18 = vstv %s1675_s15  ;;  %vm1738_vm12 = vmxor %vm1714_vm10, %vm503_vm3 }
  0xb3   : > { %v515_v15 = vsel %vm1701_vm8, %v475_v7, 0.0  ;;  %v904_v16 = vclamps-f32 %v398_v8, 1.0  ;;  %v905_v17 = vclamps-f32 %v399_v9, 1.0  ;;  %v421_v20 = vmul.f32 %v419_v6, %v1622_v60 }
  0xb4   : > { %v518_v19 = vpack.c.bf16 %v515_v15, %v514_v11  ;;  %v422_v21 = vadd.f32 %v420_v14, %v416_v10  ;;  %v428_v56 = vmul.f32 %v1625_v61, %v1601_v45  ;;  %v479_v27 = vadd.s32 16, %v1549_v3 }
  0xb5   : > { %v404_v22 = vadd.f32 1.0, %v904_v16  ;;  %v405_v23 = vadd.f32 1.0, %v905_v17  ;;  %v423_v25 = vadd.f32 %v421_v20, %v417_v13  ;;  %v480_v28 = vadd.s32 24, %v1549_v3 }
  0xb6   : > { %974 = vmatprep.mubr.msk.bf16.mxu1 %vm538_vm6, %v518_v19  ;;  %v426_v26 = vadd.f32 %v425_v18, %v422_v21  ;;  %v429_v45 = vmul.f32 %v1625_v61, %v1608_v50  ;;  %v487_v33 = vadd.s32 %v1551_v4, %v479_v27  ;;  %v524_v53 = vsel %vm1701_vm8, 0.0, %v475_v7 }
  0xb7   : > { %v406_v29 = vmul.f32 0.5, %v404_v22  ;;  %v407_v30 = vmul.f32 0.5, %v405_v23  ;;  %v427_v31 = vadd.f32 %v425_v18, %v423_v25  ;;  %v488_v34 = vadd.s32 %v1551_v4, %v480_v28 }
  0xb8   : > { %v430_v32 = vmul.f32 %v426_v26, %v1630_v0  ;;  %v493_v40 = vand.u32 1, %v487_v33  ;;  %vm662_vm1 = vcmask 125952  }
  0xb9   : > { %v519_v35 = vsel %vm1738_vm12, 0.0, %v406_v29  ;;  %v520_v36 = vsel %vm1727_vm11, 0.0, %v407_v30  ;;  %v510_v3 = vsel %vm1738_vm12, %v406_v29, 0.0  ;;  %v511_v37 = vsel %vm1727_vm11, %v407_v30, 0.0 }
  0xba   : > { %v525_v50 = vpack.c.bf16 %v520_v36, %v519_v35  ;;  %v516_v61 = vpack.c.bf16 %v511_v37, %v510_v3  ;;  %v431_v38 = vmul.f32 %v427_v31, %v1630_v0  ;;  %v432_v39 = vsub.f32 %v428_v56, %v430_v32 }
  0xbb   : > { %v494_v43 = vand.u32 1, %v488_v34  ;;  %vm499_vm13 = vcmp.eq.s32.totalorder %v493_v40, 1  ;;  %v523_v0 = vsel %vm1688_vm7, 0.0, %v1695_v2 }
  0xbc   : > { %975 = vmatmul.mubr.msk.bf16.vlgmr.msra.gmra.mrb[0].mxu1 %vm538_vm6, %v525_v50  ;;  %970 = vmatprep.mubr.msk.bf16.mxu0 %vm538_vm6, %v516_v61  ;;  %v433_v44 = vsub.f32 %v429_v45, %v431_v38  ;;  %v910_v46 = vclamps-f32 %v432_v39, 1.0  ;;  %vm506_vm15 = vmxor %vm499_vm13, %vm503_vm3  ;;  %v527_v58 = vpack.c.bf16 %v524_v53, %v523_v0 }
  0xbd   : > { %vm500_vm14 = vcmp.eq.s32.totalorder %v494_v43, 1 }
  0xbe   : > { %v911_v47 = vclamps-f32 %v433_v44, 1.0  ;;  %v438_v48 = vadd.f32 1.0, %v910_v46  ;;  %vm507_vm0 = vmxor %vm500_vm14, %vm503_vm3 }
  0xc0   : > { %v439_v51 = vadd.f32 1.0, %v911_v47  ;;  %v440_v52 = vmul.f32 0.5, %v438_v48 }
  0xc2   : > { %v441_v54 = vmul.f32 0.5, %v439_v51  ;;  %v512_v55 = vsel %vm506_vm15, %v440_v52, 0.0  ;;  %v521_v57 = vsel %vm506_vm15, 0.0, %v440_v52 }
  0xc4   : > { %v513_v59 = vsel %vm507_vm0, %v441_v54, 0.0  ;;  %v522_v62 = vsel %vm507_vm0, 0.0, %v441_v54 }
  0xc5   : > { %v517_v63 = vpack.c.bf16 %v513_v59, %v512_v55  ;;  %v526_v1 = vpack.c.bf16 %v522_v62, %v521_v57 }
  0xc7   : > { %971 = vmatmul.mubr.msk.bf16.vlgmr.msra.gmra.mrb[0].mxu0 %vm538_vm6, %v517_v63  ;;  %978 = vmatprep.mubr.msk.bf16.mxu1 %vm538_vm6, %v526_v1 }
  0xc8   : > { %979 = vmatmul.mubr.msk.bf16.gmra.mrb[4].mxu1 %vm538_vm6, %v527_v58 }
 0x18f   : > { %v976_v49 = vpop.f32.mrb[0].mxu1 }
 0x190   : > { %v955_v2 = vpack.c.bf16 %v976_v49, %v976_v49  ;;  %v607_v4 = vpop.f32.mrb[1].mxu1 }
 0x191   : > { %v953_v41 = vpack.c.bf16 %v607_v4, %v607_v4  ;;  %v977_v42 = vpop.f32.mrb[2].mxu1 }
 0x192   : > { %940 = vst.msk [vmem:[%s1773_s23 + $0x18] sm:$0xf] %vm662_vm1, %v955_v2  ;;  %v956_v5 = vpack.c.bf16 %v977_v42, %v977_v42  ;;  %v610_v6 = vpop.f32.mrb[3].mxu1 }
 0x193   : > { %667 = vst.msk [vmem:[%s1773_s23 + $0x10] sm:$0xf] %vm662_vm1, %v953_v41  ;;  %v954_v7 = vpack.c.bf16 %v610_v6, %v610_v6 }
 0x194   : > { %941 = vst.msk [vmem:[%s1773_s23 + $0x1c] sm:$0xf] %vm662_vm1, %v956_v5 }
 0x195   : > { %668 = vst.msk [vmem:[%s1773_s23 + $0x14] sm:$0xf] %vm662_vm1, %v954_v7 }
 0x19a   : > { %v972_v8 = vpop.f32.mrb[0].mxu0 }
 0x19b   : > { %v951_v9 = vpack.c.bf16 %v972_v8, %v972_v8  ;;  %v591_v10 = vpop.f32.mrb[1].mxu0  ;;  %v980_v11 = vpop.f32.mrb[4].mxu1 }
 0x19c   : > { %v949_v12 = vpack.c.bf16 %v591_v10, %v591_v10  ;;  %v973_v13 = vpop.f32.mrb[2].mxu0  ;;  %v959_v14 = vpack.c.bf16 %v980_v11, %v980_v11  ;;  %v623_v15 = vpop.f32.mrb[5].mxu1 }
 0x19d   : > { %665 = vst.msk [vmem:[%s1773_s23 + $0x8] sm:$0xf] %vm662_vm1, %v951_v9  ;;  %v952_v16 = vpack.c.bf16 %v973_v13, %v973_v13  ;;  %v594_v17 = vpop.f32.mrb[3].mxu0  ;;  %v957_v18 = vpack.c.bf16 %v623_v15, %v623_v15  ;;  %v981_v19 = vpop.f32.mrb[6].mxu1 }
 0x19e   : > { %663 = vst.msk [vmem:[%s1773_s23] sm:$0xf] %vm662_vm1, %v949_v12  ;;  %v950_v20 = vpack.c.bf16 %v594_v17, %v594_v17  ;;  %944 = vst.msk [vmem:[%s1773_s23 + $0x28] sm:$0xf] %vm662_vm1, %v959_v14  ;;  %v960_v21 = vpack.c.bf16 %v981_v19, %v981_v19  ;;  %v626_v22 = vpop.f32.mrb[7].mxu1 }
 0x19f   : > { %666 = vst.msk [vmem:[%s1773_s23 + $0xc] sm:$0xf] %vm662_vm1, %v952_v16  ;;  %942 = vst.msk [vmem:[%s1773_s23 + $0x20] sm:$0xf] %vm662_vm1, %v957_v18  ;;  %v958_v23 = vpack.c.bf16 %v626_v22, %v626_v22 }
 0x1a0   : > { %664 = vst.msk [vmem:[%s1773_s23 + $0x4] sm:$0xf] %vm662_vm1, %v950_v20  ;;  %945 = vst.msk [vmem:[%s1773_s23 + $0x2c] sm:$0xf] %vm662_vm1, %v960_v21 }
 0x1a1   : > { %943 = vst.msk [vmem:[%s1773_s23 + $0x24] sm:$0xf] %vm662_vm1, %v958_v23 }
 0x1a2   : > { %s989_s16 = smul.u32 384, %s1311_s22  ;;  %s730_s24 = sshll.u32 %s1773_s23, 4  ;;  %s731_s24 = int_to_ptr.vmem [resolvable:$true] %s730_s24 }
 0x1a3   : > { %s1253_s14 = smov 384   ;;  %p1883_p7 = scmp.ne.s32.totalorder %s1854_s27, 0 }
 0x1a4   : > { %s713_s29 = scalar_lea.hbm %s1842_s5, %s989_s16  ;;  %s1254_s0 = smov 768  }
 0x1a5   : > { %1006 = sst [smem:[#allocation15]] (%p1883_p7), %s1253_s14  ;;  %s1255_s10 = smov 6  }
 0x1a6   : > { %1007 = sst [smem:[#allocation15 + $0x1]] (%p1883_p7), %s1254_s0  ;;  %s1256_s9 = smov 64  }
 0x1a7   : > { %1008 = sst [smem:[#allocation15 + $0x2]] (%p1883_p7), %s1255_s10  ;;  %s1257_s22 = smov 4  }
 0x1a8   : > { %1009 = sst [smem:[#allocation15 + $0x3]] (%p1883_p7), %s1256_s9  ;;  %s1258_s11 = smov [#allocation14]  }
 0x1a9   : > { %1010 = sst [smem:[#allocation15 + $0x4]] (%p1883_p7), %s1256_s9  ;;  %s1259_s17 = smov 0  }
 0x1aa   : > { %1011 = sst [smem:[#allocation15 + $0x5]] (%p1883_p7), %s1257_s22 }
 0x1ab   : > { %1012 = dma.general (%p1883_p7), %s731_s24, 768, %s713_s29, %s701_s1, %s1258_s11, [#allocation15], %s1259_s17, 0  }
 0x1ac PF: > { %s758_s12 = sand.u32 1, %s1231_s18   ;;  %p1884_p10 = scmp.ne.s32.totalorder %s1849_s25, 0 }
 0x1ad   : > { %p1885_p1 = scmp.ge.s32.totalorder %s1243_s21, 2  ;;  %s759_s26 = scalar_lea.sflag [#allocation4], %s758_s12 }
 0x1af   : > { %p1032_p4 = pnand %p1885_p1, %p1884_p10 }
 0x1b1   : > { %1226 = dma.done.wait (!%p1032_p4), %s759_s26, 768  }
 0x1b2   : > { %1228 = vsyncadd (!%p1032_p4), %s759_s26, 4294966528  ;;  %p24_p0 = scmp.ge.s32.totalorder %s1349_s6, 4   ;;  %s1886_s18 = smov %s1235_s19 }
 0x1b3   : > { %s1887_s19 = smov %s1239_s20  ;;  %s1888_s20 = smov %s1410_s30 }
 0x1b4   : > { %s1889_s21 = smov %s1349_s6  ;;  %26 = sbr.rel (!%p24_p0) target bundleno = 13 (0xd), region = 122 }
 0x1bb   :  { %764 = vsyncpa [#allocation3], 1 }
 0x1bc   :  { %766 = vsyncpa [#allocation3 + $0x1], 1 }
 0x1bd   :  { %767 = vsyncpa [#allocation12], 1 }
 0x1be   :  { %769 = vsyncpa [#allocation12 + $0x1], 1 }
 0x1bf   :  { %770 = vsyncpa [#allocation4], 1 }
 0x1c0   :  { %772 = vsyncpa [#allocation4 + $0x1], 1 }
 0x1c1   :  { %773 = vsyncpa [#allocation5], 1 }
 0x1c2   :  { %775 = vsyncpa [#allocation5 + $0x1], 1 }
 0x1c3   :  { %776 = vsyncpa [#allocation8], 1 }
 0x1c4   :  { %777 = vsyncpa [#allocation6], 1 }
 0x1c5   :  { %779 = vsyncpa [#allocation6 + $0x1], 1 }

</bundles_post_ra>
